<compile_context>
chip_gen: v6e
topology: v6e:2x2x1
jax: 0.10.0
libtpu: 0.0.40
codegen_flags: <defaults>
</compile_context>

<pallas_src>
import jax
import jax.numpy as jnp
from jax import lax
from jax.experimental import pallas as pl
from jax.experimental.pallas import tpu as pltpu


def _round_up(x, m):
    return (x + m - 1) // m * m


def _make_kernel(N, C1, C1p, C2, H, W, KH, KW, pad, stripe, write_off, xpad_w):
    HW = H * W

    def kernel(x_ref, w_ref, b_ref, o_ref, xpad_ref):
        # x_ref:   (N, C1, H*W)        bf16 flat NCHW activations
        # w_ref:   (C2, KH*KW*C1p)     bf16 BN-folded weights (channel-padded taps)
        # b_ref:   (C2, 1)             f32 BN-folded bias
        # o_ref:   (N, C2, H*W)        f32 flat NCHW output
        # xpad_ref: VMEM (C1p, xpad_w) f32 zero-haloed, striped image scratch

        # One-time halo zeroing; the interior is fully overwritten below.
        # (Guard with @pl.when(pl.program_id(0) == 0) if the grid ever grows.)
        xpad_ref[...] = jnp.zeros_like(xpad_ref)

        # Each image lives in its own lane-aligned stripe with >= halo zeros on
        # both sides, so a single pltpu.roll of the whole scratch shifts every
        # image at once while the inter-stripe zeros provide the vertical
        # 'same'-padding (the circular wrap only ever brings in halo zeros).
        for n in range(N):
            off = n * stripe + write_off
            xpad_ref[0:C1, off:off + HW] = x_ref[n].astype(jnp.float32)

        xp = xpad_ref[...]                                   # (C1p, xpad_w) f32

        # Horizontal boundary masks per column shift dw = kw - pad:
        # output column w reads input column w + dw, valid iff 0 <= w+dw < W.
        col = lax.broadcasted_iota(jnp.int32, (1, HW), 1) % W
        masks = {dw: jnp.logical_and(col + dw >= 0, col + dw < W)
                 for dw in range(-pad, pad + 1) if dw != 0}

        # In-register im2col: each (kh, kw) tap is a lane rotation (XLU slot)
        # of the striped batch; per-tap channel slabs are already padded to
        # C1p (=8) sublanes so the concatenations below stay vreg-aligned.
        tap_slabs = []
        for kh in range(KH):
            for kw in range(KW):
                d = (kh - pad) * W + (kw - pad)              # flat tap offset
                rolled = xp if d == 0 else pltpu.roll(xp, shift=(-d) % xpad_w,
                                                      axis=1)
                dw = kw - pad
                imgs = []
                for n in range(N):
                    off = n * stripe + write_off
                    s = rolled[:, off:off + HW]              # (C1p, HW) aligned
                    if dw != 0:
                        s = jnp.where(masks[dw], s, 0.0)
                    imgs.append(s)
                tap_slabs.append(jnp.concatenate(imgs, axis=1))   # (C1p, N*HW)

        patch = jnp.concatenate(tap_slabs, axis=0)           # (KH*KW*C1p, N*HW)
        patch = patch.astype(jnp.bfloat16)                   # bf16 MXU operand

        # One batched MXU matmul over all taps, channels and images.
        acc = jnp.dot(w_ref[...], patch,
                      preferred_element_type=jnp.float32)    # (C2, N*HW) f32
        y = acc + b_ref[...]                                 # BN bias in f32

        # SiLU with EUP-friendly sigmoid (exp + approximate reciprocal).
        y = y * pl.reciprocal(1.0 + jnp.exp(-y), approx=True)

        for n in range(N):                                   # aligned, full-lane
            o_ref[n] = y[:, n * HW:(n + 1) * HW].astype(o_ref.dtype)

    return kernel


@jax.jit
def conv_bn_silu(x, weight, gamma, beta, running_mean, running_var, eps=1e-5):
    """Fused Conv2d(bias=False) + BatchNorm2d(eval) + SiLU.  NCHW in / NCHW out."""
    N, C1, H, W = x.shape
    C2, C1w, KH, KW = weight.shape
    if C1w != C1:
        raise NotImplementedError("groups != 1 not supported")        # TODO(synk)
    if KH != KW or KH % 2 != 1:
        raise NotImplementedError("only square, odd kernels")         # TODO(synk)
    pad = KH // 2                                   # autopad(k) default
    HW = H * W
    C1p = _round_up(C1, 8)                          # sublane-pad per-tap slabs
    KD = KH * KW * C1p

    # ---- fold BN (eval) into the conv weights; bias stays f32 (epilogue) ----
    scale = gamma.astype(jnp.float32) * lax.rsqrt(
        running_var.astype(jnp.float32) + eps)                         # (C2,)
    bias = beta.astype(jnp.float32) - running_mean.astype(jnp.float32) * scale

    w_scaled = weight.astype(jnp.float32) * scale[:, None, None, None]  # (C2,C1,KH,KW)
    w_t = jnp.transpose(w_scaled, (0, 2, 3, 1))                         # (C2,KH,KW,C1)
    w_t = jnp.pad(w_t, ((0, 0), (0, 0), (0, 0), (0, C1p - C1)))         # zero cols
    w_mat = w_t.reshape(C2, KD).astype(jnp.bfloat16)                    # bf16 MXU op
    bias_col = bias.reshape(C2, 1)                                      # f32

    # Flat NCHW activations, cast once to bf16 (halves the input DMA bytes;
    # a no-op when the surrounding model already runs bf16).
    x_flat = x.reshape(N, C1, HW).astype(jnp.bfloat16)

    # Striped halo geometry: every image sits at a lane-aligned offset with at
    # least `halo` zeros on each side so flat tap shifts never leak across
    # images or rows (row wrap is handled by the in-kernel column masks).
    halo = pad * W + pad
    write_off = _round_up(halo, 128)
    stripe = _round_up(write_off + HW + halo, 128)
    xpad_w = N * stripe
    assert write_off >= halo and stripe - HW >= halo

    kernel = _make_kernel(N, C1, C1p, C2, H, W, KH, KW, pad,
                          stripe, write_off, xpad_w)

    out_flat = pl.pallas_call(
        kernel,
        out_shape=jax.ShapeDtypeStruct((N, C2, HW), jnp.float32),
        grid_spec=pltpu.PrefetchScalarGridSpec(
            num_scalar_prefetch=0,
            grid=(1,),                       # whole (tiny) batch in one step
            in_specs=[
                pl.BlockSpec((N, C1, HW), lambda i: (0, 0, 0)),
                pl.BlockSpec((C2, KD), lambda i: (0, 0)),
                pl.BlockSpec((C2, 1), lambda i: (0, 0)),
            ],
            out_specs=pl.BlockSpec((N, C2, HW), lambda i: (0, 0, 0)),
            scratch_shapes=[
                pltpu.VMEM((C1p, xpad_w), jnp.float32),   # haloed striped batch
            ],
        ),
        compiler_params=pltpu.CompilerParams(
            dimension_semantics=("arbitrary",),
        ),
    )(x_flat, w_mat, bias_col)

    return out_flat.reshape(N, C2, H, W)


def _reference(x, weight, gamma, beta, running_mean, running_var, eps=1e-5):
    pad = weight.shape[-1] // 2
    y = lax.conv_general_dilated(
        x, weight, window_strides=(1, 1),
        padding=((pad, pad), (pad, pad)),
        dimension_numbers=("NCHW", "OIHW", "NCHW"))
    scale = gamma / jnp.sqrt(running_var + eps)
    bias = beta - running_mean * scale
    y = y * scale[None, :, None, None] + bias[None, :, None, None]
    return y * jax.nn.sigmoid(y)


if __name__ == "__main__":
    key = jax.random.PRNGKey(0)
    k_x, k_w, k_g, k_b, k_m, k_v = jax.random.split(key, 6)

    N, C1, C2, H, W, K = 2, 4, 8, 16, 16, 3

    x = jax.random.normal(k_x, (N, C1, H, W), dtype=jnp.float32)
    weight = jax.random.normal(k_w, (C2, C1, K, K), dtype=jnp.float32) * 0.1
    gamma = 1.0 + 0.1 * jax.random.normal(k_g, (C2,), dtype=jnp.float32)
    beta = 0.1 * jax.random.normal(k_b, (C2,), dtype=jnp.float32)
    running_mean = 0.1 * jax.random.normal(k_m, (C2,), dtype=jnp.float32)
    running_var = jnp.abs(jax.random.normal(k_v, (C2,), dtype=jnp.float32)) + 0.5

    out = conv_bn_silu(x, weight, gamma, beta, running_mean, running_var)
    out = jax.block_until_ready(out)

    ref = _reference(x, weight, gamma, beta, running_mean, running_var)
    assert out.shape == (N, C2, H, W)
    err = jnp.max(jnp.abs(out - ref))
    # bf16 MXU operands (f32 accumulate / epilogue) -> bf16-appropriate tolerance.
    assert jnp.allclose(out, ref, atol=3e-2, rtol=3e-2), (
        f"mismatch vs reference: max abs err = {err:.3e}")

    print("KERNEL_OK")
</pallas_src>

<mosaic_0001>
module attributes {stable_mosaic.version = 11 : i64} {
  func.func @kernel(%arg0: i32, %arg1: memref<2x4x256xbf16, #tpu.memory_space<vmem>>, %arg2: memref<8x72xbf16, #tpu.memory_space<vmem>>, %arg3: memref<8x1xf32, #tpu.memory_space<vmem>>, %arg4: memref<2x8x256xf32, #tpu.memory_space<vmem>>, %arg5: memref<8x1024xf32, #tpu.memory_space<vmem>>) attributes {dimension_semantics = [#tpu.dimension_semantics<arbitrary>], iteration_bounds = array<i64: 1>, scalar_prefetch = 0 : i64, scratch_operands = 1 : i64, tpu.core_type = #tpu.core_type<tc>, window_params = [{pipeline_mode = #tpu.pipeline_mode<synchronous>, transform_indices = @transform_0, window_bounds = array<i64: 2, 4, 256>}, {pipeline_mode = #tpu.pipeline_mode<synchronous>, transform_indices = @transform_1, window_bounds = array<i64: 8, 72>}, {pipeline_mode = #tpu.pipeline_mode<synchronous>, transform_indices = @transform_2, window_bounds = array<i64: 8, 1>}, {pipeline_mode = #tpu.pipeline_mode<synchronous>, transform_indices = @transform_3, window_bounds = array<i64: 2, 8, 256>}]} {
    %cst = arith.constant 0.000000e+00 : f32
    %0 = vector.broadcast %cst : f32 to vector<8x1024xf32>
    %c0 = arith.constant 0 : index
    %c0_0 = arith.constant 0 : index
    %1 = vector.load %arg5[%c0, %c0_0] : memref<8x1024xf32, #tpu.memory_space<vmem>>, vector<8x1024xf32>
    tpu.vector_store %arg5[%c0, %c0_0], %0 {strides = array<i32>} : memref<8x1024xf32, #tpu.memory_space<vmem>>, vector<8x1024xf32>,
    %c0_1 = arith.constant 0 : index
    %c0_2 = arith.constant 0 : index
    %c0_3 = arith.constant 0 : index
    %2 = vector.load %arg1[%c0_1, %c0_2, %c0_3] : memref<2x4x256xbf16, #tpu.memory_space<vmem>>, vector<1x4x256xbf16>
    %3 = vector.shape_cast %2 : vector<1x4x256xbf16> to vector<4x256xbf16>
    %4 = arith.extf %3 : vector<4x256xbf16> to vector<4x256xf32>
    %c0_4 = arith.constant 0 : index
    %c128 = arith.constant 128 : index
    %5 = vector.load %arg5[%c0_4, %c128] : memref<8x1024xf32, #tpu.memory_space<vmem>>, vector<4x256xf32>
    tpu.vector_store %arg5[%c0_4, %c128], %4 {strides = array<i32>} : memref<8x1024xf32, #tpu.memory_space<vmem>>, vector<4x256xf32>,
    %c1 = arith.constant 1 : index
    %c0_5 = arith.constant 0 : index
    %c0_6 = arith.constant 0 : index
    %6 = vector.load %arg1[%c1, %c0_5, %c0_6] : memref<2x4x256xbf16, #tpu.memory_space<vmem>>, vector<1x4x256xbf16>
    %7 = vector.shape_cast %6 : vector<1x4x256xbf16> to vector<4x256xbf16>
    %8 = arith.extf %7 : vector<4x256xbf16> to vector<4x256xf32>
    %c0_7 = arith.constant 0 : index
    %c640 = arith.constant 640 : index
    %9 = vector.load %arg5[%c0_7, %c640] : memref<8x1024xf32, #tpu.memory_space<vmem>>, vector<4x256xf32>
    tpu.vector_store %arg5[%c0_7, %c640], %8 {strides = array<i32>} : memref<8x1024xf32, #tpu.memory_space<vmem>>, vector<4x256xf32>,
    %c0_8 = arith.constant 0 : index
    %c0_9 = arith.constant 0 : index
    %10 = vector.load %arg5[%c0_8, %c0_9] : memref<8x1024xf32, #tpu.memory_space<vmem>>, vector<8x1024xf32>
    %11 = tpu.iota {dimensions = array<i32: 1>} : vector<1x256xi32>
    %c16_i32 = arith.constant 16 : i32
    %c0_i32 = arith.constant 0 : i32
    %12 = arith.cmpi eq, %c16_i32, %c0_i32 : i32
    %c1_i32 = arith.constant 1 : i32
    %13 = arith.select %12, %c1_i32, %c16_i32 : i32
    %14 = vector.broadcast %13 : i32 to vector<1x256xi32>
    %15 = arith.remsi %11, %14 : vector<1x256xi32>
    %c0_i32_10 = arith.constant 0 : i32
    %16 = vector.broadcast %c0_i32_10 : i32 to vector<1x256xi32>
    %17 = arith.cmpi ne, %15, %16 : vector<1x256xi32>
    %c0_i32_11 = arith.constant 0 : i32
    %18 = vector.broadcast %c0_i32_11 : i32 to vector<1x256xi32>
    %19 = arith.cmpi slt, %15, %18 : vector<1x256xi32>
    %c0_i32_12 = arith.constant 0 : i32
    %20 = arith.cmpi slt, %13, %c0_i32_12 : i32
    %21 = vector.broadcast %20 : i1 to vector<1x256xi1>
    %22 = vector.broadcast %21 : vector<1x256xi1> to vector<1x256xi1>
    %23 = arith.xori %19, %22 : vector<1x256xi1>
    %24 = arith.andi %23, %17 : vector<1x256xi1>
    %25 = vector.broadcast %13 : i32 to vector<1x256xi32>
    %26 = arith.addi %15, %25 : vector<1x256xi32>
    %27 = arith.select %24, %26, %15 : vector<1x256xi1>, vector<1x256xi32>
    %c-1_i32 = arith.constant -1 : i32
    %28 = vector.broadcast %c-1_i32 : i32 to vector<1x256xi32>
    %29 = arith.addi %27, %28 : vector<1x256xi32>
    %c0_i32_13 = arith.constant 0 : i32
    %30 = vector.broadcast %c0_i32_13 : i32 to vector<1x256xi32>
    %31 = arith.cmpi sge, %29, %30 : vector<1x256xi32>
    %c-1_i32_14 = arith.constant -1 : i32
    %32 = vector.broadcast %c-1_i32_14 : i32 to vector<1x256xi32>
    %33 = arith.addi %27, %32 : vector<1x256xi32>
    %c16_i32_15 = arith.constant 16 : i32
    %34 = vector.broadcast %c16_i32_15 : i32 to vector<1x256xi32>
    %35 = arith.cmpi slt, %33, %34 : vector<1x256xi32>
    %36 = arith.andi %31, %35 : vector<1x256xi1>
    %c1_i32_16 = arith.constant 1 : i32
    %37 = vector.broadcast %c1_i32_16 : i32 to vector<1x256xi32>
    %38 = arith.addi %27, %37 : vector<1x256xi32>
    %c0_i32_17 = arith.constant 0 : i32
    %39 = vector.broadcast %c0_i32_17 : i32 to vector<1x256xi32>
    %40 = arith.cmpi sge, %38, %39 : vector<1x256xi32>
    %c1_i32_18 = arith.constant 1 : i32
    %41 = vector.broadcast %c1_i32_18 : i32 to vector<1x256xi32>
    %42 = arith.addi %27, %41 : vector<1x256xi32>
    %c16_i32_19 = arith.constant 16 : i32
    %43 = vector.broadcast %c16_i32_19 : i32 to vector<1x256xi32>
    %44 = arith.cmpi slt, %42, %43 : vector<1x256xi32>
    %45 = arith.andi %40, %44 : vector<1x256xi1>
    %c17_i32 = arith.constant 17 : i32
    %46 = tpu.dynamic_rotate %10 by %c17_i32 dim 1 : vector<8x1024xf32>, i32 -> vector<8x1024xf32>
    %47 = vector.extract_strided_slice %46 {offsets = [0, 128], sizes = [8, 256], strides = [1, 1]} : vector<8x1024xf32> to vector<8x256xf32>
    %cst_20 = arith.constant 0.000000e+00 : f32
    %48 = vector.shape_cast %36 : vector<1x256xi1> to vector<1x256xi1>
    %49 = vector.broadcast %48 : vector<1x256xi1> to vector<8x256xi1>
    %50 = vector.broadcast %cst_20 : f32 to vector<8x256xf32>
    %51 = arith.select %49, %47, %50 : vector<8x256xi1>, vector<8x256xf32>
    %52 = vector.extract_strided_slice %46 {offsets = [0, 640], sizes = [8, 256], strides = [1, 1]} : vector<8x1024xf32> to vector<8x256xf32>
    %cst_21 = arith.constant 0.000000e+00 : f32
    %53 = vector.shape_cast %36 : vector<1x256xi1> to vector<1x256xi1>
    %54 = vector.broadcast %53 : vector<1x256xi1> to vector<8x256xi1>
    %55 = vector.broadcast %cst_21 : f32 to vector<8x256xf32>
    %56 = arith.select %54, %52, %55 : vector<8x256xi1>, vector<8x256xf32>
    %57 = tpu.concatenate %51, %56 in 1 : vector<8x256xf32>, vector<8x256xf32> -> vector<8x512xf32>
    %c16_i32_22 = arith.constant 16 : i32
    %58 = tpu.dynamic_rotate %10 by %c16_i32_22 dim 1 : vector<8x1024xf32>, i32 -> vector<8x1024xf32>
    %59 = vector.extract_strided_slice %58 {offsets = [0, 128], sizes = [8, 256], strides = [1, 1]} : vector<8x1024xf32> to vector<8x256xf32>
    %60 = vector.extract_strided_slice %58 {offsets = [0, 640], sizes = [8, 256], strides = [1, 1]} : vector<8x1024xf32> to vector<8x256xf32>
    %61 = tpu.concatenate %59, %60 in 1 : vector<8x256xf32>, vector<8x256xf32> -> vector<8x512xf32>
    %c15_i32 = arith.constant 15 : i32
    %62 = tpu.dynamic_rotate %10 by %c15_i32 dim 1 : vector<8x1024xf32>, i32 -> vector<8x1024xf32>
    %63 = vector.extract_strided_slice %62 {offsets = [0, 128], sizes = [8, 256], strides = [1, 1]} : vector<8x1024xf32> to vector<8x256xf32>
    %cst_23 = arith.constant 0.000000e+00 : f32
    %64 = vector.shape_cast %45 : vector<1x256xi1> to vector<1x256xi1>
    %65 = vector.broadcast %64 : vector<1x256xi1> to vector<8x256xi1>
    %66 = vector.broadcast %cst_23 : f32 to vector<8x256xf32>
    %67 = arith.select %65, %63, %66 : vector<8x256xi1>, vector<8x256xf32>
    %68 = vector.extract_strided_slice %62 {offsets = [0, 640], sizes = [8, 256], strides = [1, 1]} : vector<8x1024xf32> to vector<8x256xf32>
    %cst_24 = arith.constant 0.000000e+00 : f32
    %69 = vector.shape_cast %45 : vector<1x256xi1> to vector<1x256xi1>
    %70 = vector.broadcast %69 : vector<1x256xi1> to vector<8x256xi1>
    %71 = vector.broadcast %cst_24 : f32 to vector<8x256xf32>
    %72 = arith.select %70, %68, %71 : vector<8x256xi1>, vector<8x256xf32>
    %73 = tpu.concatenate %67, %72 in 1 : vector<8x256xf32>, vector<8x256xf32> -> vector<8x512xf32>
    %c1_i32_25 = arith.constant 1 : i32
    %74 = tpu.dynamic_rotate %10 by %c1_i32_25 dim 1 : vector<8x1024xf32>, i32 -> vector<8x1024xf32>
    %75 = vector.extract_strided_slice %74 {offsets = [0, 128], sizes = [8, 256], strides = [1, 1]} : vector<8x1024xf32> to vector<8x256xf32>
    %cst_26 = arith.constant 0.000000e+00 : f32
    %76 = vector.shape_cast %36 : vector<1x256xi1> to vector<1x256xi1>
    %77 = vector.broadcast %76 : vector<1x256xi1> to vector<8x256xi1>
    %78 = vector.broadcast %cst_26 : f32 to vector<8x256xf32>
    %79 = arith.select %77, %75, %78 : vector<8x256xi1>, vector<8x256xf32>
    %80 = vector.extract_strided_slice %74 {offsets = [0, 640], sizes = [8, 256], strides = [1, 1]} : vector<8x1024xf32> to vector<8x256xf32>
    %cst_27 = arith.constant 0.000000e+00 : f32
    %81 = vector.shape_cast %36 : vector<1x256xi1> to vector<1x256xi1>
    %82 = vector.broadcast %81 : vector<1x256xi1> to vector<8x256xi1>
    %83 = vector.broadcast %cst_27 : f32 to vector<8x256xf32>
    %84 = arith.select %82, %80, %83 : vector<8x256xi1>, vector<8x256xf32>
    %85 = tpu.concatenate %79, %84 in 1 : vector<8x256xf32>, vector<8x256xf32> -> vector<8x512xf32>
    %86 = vector.extract_strided_slice %10 {offsets = [0, 128], sizes = [8, 256], strides = [1, 1]} : vector<8x1024xf32> to vector<8x256xf32>
    %87 = vector.extract_strided_slice %10 {offsets = [0, 640], sizes = [8, 256], strides = [1, 1]} : vector<8x1024xf32> to vector<8x256xf32>
    %88 = tpu.concatenate %86, %87 in 1 : vector<8x256xf32>, vector<8x256xf32> -> vector<8x512xf32>
    %c1023_i32 = arith.constant 1023 : i32
    %89 = tpu.dynamic_rotate %10 by %c1023_i32 dim 1 : vector<8x1024xf32>, i32 -> vector<8x1024xf32>
    %90 = vector.extract_strided_slice %89 {offsets = [0, 128], sizes = [8, 256], strides = [1, 1]} : vector<8x1024xf32> to vector<8x256xf32>
    %cst_28 = arith.constant 0.000000e+00 : f32
    %91 = vector.shape_cast %45 : vector<1x256xi1> to vector<1x256xi1>
    %92 = vector.broadcast %91 : vector<1x256xi1> to vector<8x256xi1>
    %93 = vector.broadcast %cst_28 : f32 to vector<8x256xf32>
    %94 = arith.select %92, %90, %93 : vector<8x256xi1>, vector<8x256xf32>
    %95 = vector.extract_strided_slice %89 {offsets = [0, 640], sizes = [8, 256], strides = [1, 1]} : vector<8x1024xf32> to vector<8x256xf32>
    %cst_29 = arith.constant 0.000000e+00 : f32
    %96 = vector.shape_cast %45 : vector<1x256xi1> to vector<1x256xi1>
    %97 = vector.broadcast %96 : vector<1x256xi1> to vector<8x256xi1>
    %98 = vector.broadcast %cst_29 : f32 to vector<8x256xf32>
    %99 = arith.select %97, %95, %98 : vector<8x256xi1>, vector<8x256xf32>
    %100 = tpu.concatenate %94, %99 in 1 : vector<8x256xf32>, vector<8x256xf32> -> vector<8x512xf32>
    %c1009_i32 = arith.constant 1009 : i32
    %101 = tpu.dynamic_rotate %10 by %c1009_i32 dim 1 : vector<8x1024xf32>, i32 -> vector<8x1024xf32>
    %102 = vector.extract_strided_slice %101 {offsets = [0, 128], sizes = [8, 256], strides = [1, 1]} : vector<8x1024xf32> to vector<8x256xf32>
    %cst_30 = arith.constant 0.000000e+00 : f32
    %103 = vector.shape_cast %36 : vector<1x256xi1> to vector<1x256xi1>
    %104 = vector.broadcast %103 : vector<1x256xi1> to vector<8x256xi1>
    %105 = vector.broadcast %cst_30 : f32 to vector<8x256xf32>
    %106 = arith.select %104, %102, %105 : vector<8x256xi1>, vector<8x256xf32>
    %107 = vector.extract_strided_slice %101 {offsets = [0, 640], sizes = [8, 256], strides = [1, 1]} : vector<8x1024xf32> to vector<8x256xf32>
    %cst_31 = arith.constant 0.000000e+00 : f32
    %108 = vector.shape_cast %36 : vector<1x256xi1> to vector<1x256xi1>
    %109 = vector.broadcast %108 : vector<1x256xi1> to vector<8x256xi1>
    %110 = vector.broadcast %cst_31 : f32 to vector<8x256xf32>
    %111 = arith.select %109, %107, %110 : vector<8x256xi1>, vector<8x256xf32>
    %112 = tpu.concatenate %106, %111 in 1 : vector<8x256xf32>, vector<8x256xf32> -> vector<8x512xf32>
    %c1008_i32 = arith.constant 1008 : i32
    %113 = tpu.dynamic_rotate %10 by %c1008_i32 dim 1 : vector<8x1024xf32>, i32 -> vector<8x1024xf32>
    %114 = vector.extract_strided_slice %113 {offsets = [0, 128], sizes = [8, 256], strides = [1, 1]} : vector<8x1024xf32> to vector<8x256xf32>
    %115 = vector.extract_strided_slice %113 {offsets = [0, 640], sizes = [8, 256], strides = [1, 1]} : vector<8x1024xf32> to vector<8x256xf32>
    %116 = tpu.concatenate %114, %115 in 1 : vector<8x256xf32>, vector<8x256xf32> -> vector<8x512xf32>
    %c1007_i32 = arith.constant 1007 : i32
    %117 = tpu.dynamic_rotate %10 by %c1007_i32 dim 1 : vector<8x1024xf32>, i32 -> vector<8x1024xf32>
    %118 = vector.extract_strided_slice %117 {offsets = [0, 128], sizes = [8, 256], strides = [1, 1]} : vector<8x1024xf32> to vector<8x256xf32>
    %cst_32 = arith.constant 0.000000e+00 : f32
    %119 = vector.shape_cast %45 : vector<1x256xi1> to vector<1x256xi1>
    %120 = vector.broadcast %119 : vector<1x256xi1> to vector<8x256xi1>
    %121 = vector.broadcast %cst_32 : f32 to vector<8x256xf32>
    %122 = arith.select %120, %118, %121 : vector<8x256xi1>, vector<8x256xf32>
    %123 = vector.extract_strided_slice %117 {offsets = [0, 640], sizes = [8, 256], strides = [1, 1]} : vector<8x1024xf32> to vector<8x256xf32>
    %cst_33 = arith.constant 0.000000e+00 : f32
    %124 = vector.shape_cast %45 : vector<1x256xi1> to vector<1x256xi1>
    %125 = vector.broadcast %124 : vector<1x256xi1> to vector<8x256xi1>
    %126 = vector.broadcast %cst_33 : f32 to vector<8x256xf32>
    %127 = arith.select %125, %123, %126 : vector<8x256xi1>, vector<8x256xf32>
    %128 = tpu.concatenate %122, %127 in 1 : vector<8x256xf32>, vector<8x256xf32> -> vector<8x512xf32>
    %129 = tpu.concatenate %57, %61, %73, %85, %88, %100, %112, %116, %128 in 0 : vector<8x512xf32>, vector<8x512xf32>, vector<8x512xf32>, vector<8x512xf32>, vector<8x512xf32>, vector<8x512xf32>, vector<8x512xf32>, vector<8x512xf32>, vector<8x512xf32> -> vector<72x512xf32>
    %130 = arith.truncf %129 : vector<72x512xf32> to vector<72x512xbf16>
    %c0_34 = arith.constant 0 : index
    %c0_35 = arith.constant 0 : index
    %131 = vector.load %arg2[%c0_34, %c0_35] : memref<8x72xbf16, #tpu.memory_space<vmem>>, vector<8x72xbf16>
    %cst_36 = arith.constant dense<0.000000e+00> : vector<8x512xf32>
    %132 = tpu.matmul %131, %130, %cst_36 {dimension_numbers = #tpu.dot_dimension_numbers<[1], [0], [0], [1], [0, 0, 1, 1], [], []>} : vector<8x72xbf16>, vector<72x512xbf16>, vector<8x512xf32> -> vector<8x512xf32>
    %c0_37 = arith.constant 0 : index
    %c0_38 = arith.constant 0 : index
    %133 = vector.load %arg3[%c0_37, %c0_38] : memref<8x1xf32, #tpu.memory_space<vmem>>, vector<8x1xf32>
    %134 = vector.broadcast %133 : vector<8x1xf32> to vector<8x512xf32>
    %135 = arith.addf %132, %134 : vector<8x512xf32>
    %cst_39 = arith.constant 0.000000e+00 : f32
    %136 = vector.broadcast %cst_39 : f32 to vector<8x512xf32>
    %137 = arith.subf %136, %135 : vector<8x512xf32>
    %138 = math.exp %137 : vector<8x512xf32>
    %cst_40 = arith.constant 1.000000e+00 : f32
    %139 = vector.broadcast %cst_40 : f32 to vector<8x512xf32>
    %140 = arith.addf %139, %138 : vector<8x512xf32>
    %141 = tpu.reciprocal %140 {approx = true} : vector<8x512xf32> -> vector<8x512xf32>
    %142 = arith.mulf %135, %141 : vector<8x512xf32>
    %143 = vector.extract_strided_slice %142 {offsets = [0, 0], sizes = [8, 256], strides = [1, 1]} : vector<8x512xf32> to vector<8x256xf32>
    %c0_41 = arith.constant 0 : index
    %c0_42 = arith.constant 0 : index
    %c0_43 = arith.constant 0 : index
    %144 = vector.load %arg4[%c0_41, %c0_42, %c0_43] : memref<2x8x256xf32, #tpu.memory_space<vmem>>, vector<1x8x256xf32>
    %145 = vector.shape_cast %144 : vector<1x8x256xf32> to vector<8x256xf32>
    %146 = vector.shape_cast %143 : vector<8x256xf32> to vector<1x8x256xf32>
    tpu.vector_store %arg4[%c0_41, %c0_42, %c0_43], %146 {strides = array<i32>} : memref<2x8x256xf32, #tpu.memory_space<vmem>>, vector<1x8x256xf32>,
    %147 = vector.extract_strided_slice %142 {offsets = [0, 256], sizes = [8, 256], strides = [1, 1]} : vector<8x512xf32> to vector<8x256xf32>
    %c1_44 = arith.constant 1 : index
    %c0_45 = arith.constant 0 : index
    %c0_46 = arith.constant 0 : index
    %148 = vector.load %arg4[%c1_44, %c0_45, %c0_46] : memref<2x8x256xf32, #tpu.memory_space<vmem>>, vector<1x8x256xf32>
    %149 = vector.shape_cast %148 : vector<1x8x256xf32> to vector<8x256xf32>
    %150 = vector.shape_cast %147 : vector<8x256xf32> to vector<1x8x256xf32>
    tpu.vector_store %arg4[%c1_44, %c0_45, %c0_46], %150 {strides = array<i32>} : memref<2x8x256xf32, #tpu.memory_space<vmem>>, vector<1x8x256xf32>,
    return
  }
  func.func @transform_0(%arg0: i32) -> (i32, i32, i32) {
    %c0_i32 = arith.constant 0 : i32
    %c0_i32_0 = arith.constant 0 : i32
    %c0_i32_1 = arith.constant 0 : i32
    %c0_i32_2 = arith.constant 0 : i32
    return %c0_i32, %c0_i32_0, %c0_i32_1 : i32, i32, i32
  }
  func.func @transform_1(%arg0: i32) -> (i32, i32) {
    %c0_i32 = arith.constant 0 : i32
    %c0_i32_0 = arith.constant 0 : i32
    %c0_i32_1 = arith.constant 0 : i32
    return %c0_i32, %c0_i32_0 : i32, i32
  }
  func.func @transform_2(%arg0: i32) -> (i32, i32) {
    %c0_i32 = arith.constant 0 : i32
    %c0_i32_0 = arith.constant 0 : i32
    %c0_i32_1 = arith.constant 0 : i32
    return %c0_i32, %c0_i32_0 : i32, i32
  }
  func.func @transform_3(%arg0: i32) -> (i32, i32, i32) {
    %c0_i32 = arith.constant 0 : i32
    %c0_i32_0 = arith.constant 0 : i32
    %c0_i32_1 = arith.constant 0 : i32
    %c0_i32_2 = arith.constant 0 : i32
    return %c0_i32, %c0_i32_0, %c0_i32_1 : i32, i32, i32
  }
}

</mosaic_0001>

<bundles_post_ra>
// kernel: conv_bn_silu.1
= control target key start
LH: loop header
LB: loop body
LE: loop exit
PB: predicated region body
PF: predicated region fallthrough
CT: control target
= control target key end

     0   :  { %v619_v0 = vmov 0.0   ;;  %s621_s14 = smov 113   ;;  %s622_s15 = smov 112   ;;  %v627_v16 = vmov 0   ;;  %v46_v18 = vlaneseq  ;;  %vm288_vm4 = vcmask 1043456   ;;  %s840_s0 = inlined_call_operand.vmem [shape: bf16[2,4,256], index: 0, kind: input, shape index: {}]   ;;  %s841_s2 = inlined_call_operand.vmem [shape: f32[8,1], index: 2, kind: input, shape index: {}]   ;;  %s842_s1 = inlined_call_operand.vmem [shape: bf16[8,72], index: 1, kind: input, shape index: {}]   ;;  %s843_s3 = inlined_call_operand.vmem [shape: f32[2,8,256], index: 3, kind: output, shape index: {}]  }
   0x1   :  { %20 = vst [vmem:[#allocation2 + $0x20] sm:$0xff] %v619_v0  ;;  %v416_v1 = vld [vmem:[%s840_s0] sm:$0xff]   ;;  %16 = vst [vmem:[#allocation2] sm:$0xff] %v619_v0  ;;  %s620_s0 = smov 111   ;;  %s623_s16 = smov 127   ;;  %333 = vmatprep.mubr.bf16.mxu0 %v627_v16  ;;  %374 = vmatprep.mubr.bf16.mxu1 %v627_v16  ;;  %vm629_vm9 = vmmov 1  }
   0x2   :  { %17 = vst [vmem:[#allocation2 + $0x18] sm:$0xff] %v619_v0  ;;  %21 = vst [vmem:[#allocation2 + $0x28] sm:$0xff] %v619_v0  ;;  %v32_v2 = vunpack.c.h.bf16 %v416_v1  ;;  %v24_v3 = vunpack.c.l.bf16 %v416_v1  ;;  %s624_s17 = smov 15   ;;  %s625_s18 = smov 1   ;;  %602 = vset.pattern.permute.xlu0 %v627_v16  ;;  %v278_v17 = vld [vmem:[%s841_s2] sm:$0xff]  ;;  %v673_v19 = vand.u32 127, %v46_v18 }
   0x3   :  { %s626_s19 = smov 17   ;;  %s628_s20 = smov 16  }
   0x4   :  { %36 = vst [vmem:[#allocation2 + $0x20] sm:$0xf] %v32_v2  ;;  %v34_v4 = vcombine.high %v32_v2, %v32_v2  ;;  %28 = vst [vmem:[#allocation2] sm:$0xf] %v24_v3  ;;  %v26_v5 = vcombine.high %v24_v3, %v24_v3  ;;  %v48_v20 = vadd.s32 128, %v673_v19  ;;  %v53_v22 = vand.u32 15, %v673_v19 }
   0x5   :  { %vm248_vm0 = vcmp.lt.s32.totalorder %v673_v19, 111  ;;  %vm210_vm3 = vcmp.lt.s32.totalorder %v673_v19, 113  ;;  %vm231_vm5 = vcmp.lt.s32.totalorder %v673_v19, 112  ;;  %vm189_vm7 = vcmp.lt.s32.totalorder %v673_v19, 127  ;;  %v277_v3 = vld [vmem:[%s842_s1] sm:$0xf] }
   0x6   :  { %29 = vst [vmem:[#allocation2 + $0x18] sm:$0xf] %v26_v5  ;;  %37 = vst [vmem:[#allocation2 + $0x28] sm:$0xf] %v34_v4  ;;  %v60_v21 = vand.u32 15, %v48_v20  ;;  %v681_v26 = vadd.s32 1, %v53_v22 }
   0x7   :  { %v698_v46 = vadd.s32 4294967295, %v53_v22  ;;  %vm143_vm14 = vcmp.lt.s32.totalorder %v673_v19, 15  ;;  %vm168_vm15 = vcmp.lt.s32.totalorder %v673_v19, 1 }
   0x8   :  { %v679_v25 = vadd.s32 1, %v60_v21  ;;  %vm85_vm2 = vcmp.lt.s32.totalorder %v681_v26, 16  ;;  %v686_v35 = vadd.s32 4294967295, %v60_v21 }
   0x9   :  { %vm75_vm8 = vcmp.ge.s32.totalorder %v698_v46, 0  ;;  %vm427_vm13 = vmpackc.low %vm85_vm2, %vm629_vm9 }
   0xa   :  { %vm86_vm1 = vcmp.lt.s32.totalorder %v679_v25, 16  ;;  %vm76_vm6 = vcmp.ge.s32.totalorder %v686_v35, 0  ;;  %vm741_vm11 = vmpackc.low %vm629_vm9, %vm75_vm8 }
   0xb   :  { %v653_v6 = vld [vmem:[#allocation2 + $0x20] sm:$0xff]  ;;  %vm718_vm10 = vmpackc.low %vm629_vm9, %vm76_vm6 }
   0xc   :  { %v655_v7 = vld [vmem:[#allocation2] sm:$0xff]  ;;  %v482_v8 = vpack.i.bf16 %v653_v6, %v619_v0  ;;  %vm749_vm12 = vmpackc.low %vm86_vm1, %vm629_vm9 }
   0xd   :  { %v487_v9 = vpack.i.bf16 %v653_v6, %v655_v7  ;;  %v660_v10 = vld [vmem:[#allocation2 + $0x28] sm:$0xff]  ;;  %v662_v11 = vld [vmem:[#allocation2 + $0x18] sm:$0xff] }
   0xe   :  { %483 = vrot.lane.b32.xlu0 %v482_v8, %s620_s0  ;;  %v497_v12 = vpack.i.bf16 %v619_v0, %v660_v10  ;;  %v492_v13 = vpack.i.bf16 %v662_v11, %v655_v7  ;;  %v502_v14 = vpack.i.bf16 %v619_v0, %v662_v11  ;;  %v547_v15 = vpack.i.bf16 %v660_v10, %v653_v6 }
   0xf   :  { %488 = vrot.lane.b32.xlu1 %v487_v9, %s621_s14 }
  0x12   :  { %493 = vrot.lane.b32.xlu0 %v492_v13, %s620_s0 }
  0x13   :  { %498 = vrot.lane.b32.xlu1 %v497_v12, %s620_s0 }
  0x16   :  { %508 = vrot.lane.b32.xlu0 %v497_v12, %s621_s14 }
  0x17   :  { %503 = vrot.lane.b32.xlu1 %v502_v14, %s621_s14 }
  0x1a   :  { %518 = vrot.lane.b32.xlu0 %v497_v12, %s622_s15 }
  0x1b   :  { %513 = vrot.lane.b32.xlu1 %v502_v14, %s622_s15 }
  0x1e   :  { %523 = vrot.lane.b32.xlu0 %v487_v9, %s622_s15 }
  0x1f   :  { %528 = vrot.lane.b32.xlu1 %v502_v14, %s623_s16 }
  0x22   :  { %533 = vrot.lane.b32.xlu0 %v497_v12, %s623_s16 }
  0x23   :  { %538 = vrot.lane.b32.xlu1 %v487_v9, %s623_s16 }
  0x26   :  { %543 = vrot.lane.b32.xlu0 %v492_v13, %s624_s17 }
  0x27   :  { %548 = vrot.lane.b32.xlu1 %v547_v15, %s624_s17 }
  0x2a   :  { %553 = vrot.lane.b32.xlu0 %v492_v13, %s625_s18 }
  0x2b   :  { %558 = vrot.lane.b32.xlu1 %v547_v15, %s625_s18 }
  0x2e   :  { %563 = vrot.lane.b32.xlu0 %v619_v0, %s624_s17 }
  0x2f   :  { %568 = vrot.lane.b32.xlu1 %v619_v0, %s625_s18 }
  0x32   :  { %573 = vrot.lane.b32.xlu0 %v492_v13, %s626_s19 }
  0x33   :  { %578 = vrot.lane.b32.xlu1 %v547_v15, %s626_s19 }
  0x36   :  { %583 = vrot.lane.b32.xlu0 %v492_v13, %s628_s20 }
  0x37   :  { %588 = vrot.lane.b32.xlu1 %v547_v15, %s628_s20 }
  0x3a   :  { %593 = vrot.lane.b32.xlu0 %v619_v0, %s626_s19 }
  0x3b   :  { %598 = vrot.lane.b32.xlu1 %v619_v0, %s628_s20 }
  0x3e   :  { %281 = vperm.xlu0 %602, %v278_v17  }
  0x80   :  { %v484_v23 = vpop.permute.xlu0 %483 }
  0x81   :  { %v677_v24 = vpop.permute.xlu1 %488  ;;  %v486_v27 = vunpack.i.h.bf16 %v484_v23  ;;  %v485_v28 = vunpack.i.l.bf16 %v484_v23 }
  0x82   :  { %v491_v4 = vunpack.i.h.bf16 %v677_v24  ;;  %v490_v5 = vunpack.i.l.bf16 %v677_v24 }
  0x84   :  { %v494_v30 = vpop.permute.xlu0 %493 }
  0x85   :  { %v499_v29 = vpop.permute.xlu1 %498  ;;  %v496_v33 = vunpack.i.h.bf16 %v494_v30  ;;  %v495_v34 = vunpack.i.l.bf16 %v494_v30 }
  0x86   :  { %v501_v31 = vunpack.i.h.bf16 %v499_v29  ;;  %v500_v32 = vunpack.i.l.bf16 %v499_v29 }
  0x87   :  { %v251_v36 = vsel %vm248_vm0, %v496_v33, %v485_v28  ;;  %v252_v39 = vsel %vm248_vm0, %v495_v34, %v496_v33 }
  0x88   :  { %v249_v37 = vsel %vm248_vm0, %v500_v32, %v501_v31  ;;  %v250_v38 = vsel %vm248_vm0, %v486_v27, %v500_v32  ;;  %v509_v41 = vpop.permute.xlu0 %508  ;;  %v254_v42 = vsel %vm86_vm1, %v251_v36, 0.0  ;;  %v253_v45 = vsel %vm85_vm2, %v252_v39, 0.0  ;;  %vm430_vm0 = vmpackc.low %vm76_vm6, %vm86_vm1 }
  0x89   :  { %v504_v40 = vpop.permute.xlu1 %503  ;;  %v256_v43 = vsel %vm86_vm1, %v249_v37, 0.0  ;;  %v255_v44 = vsel %vm85_vm2, %v250_v38, 0.0  ;;  %v274_v47 = vpack.c.bf16 %v254_v42, %v254_v42  ;;  %v273_v50 = vpack.c.bf16 %v253_v45, %v253_v45  ;;  %vm433_vm1 = vmpackc.low %vm75_vm8, %vm85_vm2 }
  0x8a   :  { %v276_v48 = vpack.c.bf16 %v256_v43, %v256_v43  ;;  %v275_v49 = vpack.c.bf16 %v255_v44, %v255_v44  ;;  %v506_v51 = vunpack.i.h.bf16 %v504_v40  ;;  %v505_v52 = vunpack.i.l.bf16 %v504_v40 }
  0x8b   :  { %v511_v53 = vunpack.i.h.bf16 %v509_v41  ;;  %v510_v54 = vunpack.i.l.bf16 %v509_v41  ;;  %417 = vmatprep.subr.msk.bf16.mxu0 %vm288_vm4, %v274_v47  ;;  %v290_v58 = vsel %vm288_vm4, %v273_v50, 0  ;;  %vm284_vm2 = vcmask 588800  }
  0x8c   :  { %443 = vmatprep.subr.msk.bf16.mxu1 %vm288_vm4, %v276_v48  ;;  %v296_v55 = vsel %vm288_vm4, %v275_v49, 0  ;;  %v519_v57 = vpop.permute.xlu0 %518  ;;  %308 = vmatpush1.bf16.msra.mxu0 %v290_v58  ;;  %v213_v63 = vsel %vm210_vm3, %v505_v52, %v506_v51  ;;  %v214_v18 = vsel %vm210_vm3, %v490_v5, %v505_v52  ;;  %vm126_vm4 = vcmp.lt.s32.totalorder %v673_v19, 16 }
  0x8d   :  { %v514_v56 = vpop.permute.xlu1 %513  ;;  %349 = vmatpush1.bf16.msra.mxu1 %v296_v55  ;;  %v521_v61 = vunpack.i.h.bf16 %v519_v57  ;;  %v520_v62 = vunpack.i.l.bf16 %v519_v57  ;;  %v211_v0 = vsel %vm210_vm3, %v510_v54, %v511_v53  ;;  %v212_v20 = vsel %vm210_vm3, %v491_v4, %v510_v54 }
  0x8e   :  { %v516_v59 = vunpack.i.h.bf16 %v514_v56  ;;  %v515_v60 = vunpack.i.l.bf16 %v514_v56  ;;  %vm101_vm3 = vcmp.lt.s32.totalorder %v673_v19, 17 }
  0x8f   :  { %v232_v2 = vsel %vm231_vm5, %v520_v62, %v521_v61 }
  0x90   :  { %v234_v1 = vsel %vm231_vm5, %v515_v60, %v516_v59  ;;  %v445_v9 = vpack.c.bf16 %v232_v2, %v211_v0  ;;  %v524_v13 = vpop.permute.xlu0 %523 }
  0x91   :  { %v419_v8 = vpack.c.bf16 %v234_v1, %v213_v63  ;;  %v529_v12 = vpop.permute.xlu1 %528  ;;  %v526_v16 = vunpack.i.h.bf16 %v524_v13  ;;  %v525_v17 = vunpack.i.l.bf16 %v524_v13 }
  0x92   :  { %v531_v14 = vunpack.i.h.bf16 %v529_v12  ;;  %v530_v15 = vunpack.i.l.bf16 %v529_v12  ;;  %446 = vmatprep.subr.msk.bf16.mxu1 %vm718_vm10, %v445_v9 }
  0x93   :  { %420 = vmatprep.subr.msk.bf16.mxu0 %vm718_vm10, %v419_v8  ;;  %v233_v22 = vsel %vm231_vm5, %v526_v16, %v520_v62  ;;  %v235_v23 = vsel %vm231_vm5, %v525_v17, %v515_v60 }
  0x94   :  { %v192_v21 = vsel %vm189_vm7, %v530_v15, %v531_v14  ;;  %v422_v28 = vpack.c.bf16 %v235_v23, %v214_v18  ;;  %v448_v29 = vpack.c.bf16 %v233_v22, %v212_v20  ;;  %v534_v31 = vpop.permute.xlu0 %533 }
  0x95   :  { %v425_v27 = vpack.c.bf16 %v192_v21, %v662_v11  ;;  %v539_v30 = vpop.permute.xlu1 %538  ;;  %v536_v36 = vunpack.i.h.bf16 %v534_v31  ;;  %v535_v37 = vunpack.i.l.bf16 %v534_v31 }
  0x96   :  { %v541_v33 = vunpack.i.h.bf16 %v539_v30  ;;  %v540_v34 = vunpack.i.l.bf16 %v539_v30  ;;  %423 = vmatpush1.bf16.msk.msra.mxu0 %vm741_vm11, %v422_v28  ;;  %449 = vmatpush1.bf16.msk.msra.mxu1 %vm741_vm11, %v448_v29 }
  0x97   :  { %v190_v38 = vsel %vm189_vm7, %v535_v37, %v536_v36  ;;  %426 = vmatprep.subr.msk.bf16.mxu0 %vm749_vm12, %v425_v27 }
  0x98   :  { %v193_v11 = vsel %vm189_vm7, %v540_v34, %v530_v15  ;;  %v191_v39 = vsel %vm189_vm7, %v541_v33, %v535_v37  ;;  %v451_v41 = vpack.c.bf16 %v190_v38, %v660_v10  ;;  %v544_v44 = vpop.permute.xlu0 %543 }
  0x99   :  { %v428_v40 = vpack.c.bf16 %v193_v11, %v655_v7  ;;  %v454_v42 = vpack.c.bf16 %v191_v39, %v653_v6  ;;  %v549_v43 = vpop.permute.xlu1 %548  ;;  %v546_v48 = vunpack.i.h.bf16 %v544_v44  ;;  %v545_v49 = vunpack.i.l.bf16 %v544_v44 }
  0x9a   :  { %452 = vmatprep.subr.msk.bf16.mxu1 %vm749_vm12, %v451_v41  ;;  %v551_v45 = vunpack.i.h.bf16 %v549_v43  ;;  %v550_v47 = vunpack.i.l.bf16 %v549_v43 }
  0x9b   :  { %429 = vmatpush1.bf16.msk.msra.mxu0 %vm427_vm13, %v428_v40  ;;  %455 = vmatpush1.bf16.msk.msra.mxu1 %vm427_vm13, %v454_v42  ;;  %v146_v54 = vsel %vm143_vm14, %v545_v49, %v546_v48 }
  0x9c   :  { %v554_v50 = vpop.permute.xlu0 %553  ;;  %v144_v53 = vsel %vm143_vm14, %v550_v47, %v551_v45 }
  0x9d   :  { %v559_v7 = vpop.permute.xlu1 %558  ;;  %v556_v6 = vunpack.i.h.bf16 %v554_v50  ;;  %v555_v52 = vunpack.i.l.bf16 %v554_v50 }
  0x9e   :  { %v561_v10 = vunpack.i.h.bf16 %v559_v7  ;;  %v560_v51 = vunpack.i.l.bf16 %v559_v7 }
  0x9f   :  { %v171_v56 = vsel %vm168_vm15, %v555_v52, %v556_v6 }
  0xa0   :  { %v169_v55 = vsel %vm168_vm15, %v560_v51, %v561_v10  ;;  %v431_v58 = vpack.c.bf16 %v171_v56, %v146_v54  ;;  %v564_v60 = vpop.permute.xlu0 %563 }
  0xa1   :  { %v457_v57 = vpack.c.bf16 %v169_v55, %v144_v53  ;;  %v569_v59 = vpop.permute.xlu1 %568  ;;  %v566_v63 = vunpack.i.h.bf16 %v564_v60  ;;  %v565_v0 = vunpack.i.l.bf16 %v564_v60 }
  0xa2   :  { %v571_v61 = vunpack.i.h.bf16 %v569_v59  ;;  %v570_v62 = vunpack.i.l.bf16 %v569_v59  ;;  %432 = vmatprep.subr.msk.bf16.mxu0 %vm430_vm0, %v431_v58 }
  0xa3   :  { %458 = vmatprep.subr.msk.bf16.mxu1 %vm430_vm0, %v457_v57  ;;  %v145_v25 = vsel %vm143_vm14, %v566_v63, %v550_v47  ;;  %v147_v35 = vsel %vm143_vm14, %v565_v0, %v545_v49 }
  0xa4   :  { %v170_v1 = vsel %vm168_vm15, %v571_v61, %v560_v51  ;;  %v172_v2 = vsel %vm168_vm15, %v570_v62, %v555_v52  ;;  %v574_v9 = vpop.permute.xlu0 %573 }
  0xa5   :  { %v460_v4 = vpack.c.bf16 %v170_v1, %v145_v25  ;;  %v434_v5 = vpack.c.bf16 %v172_v2, %v147_v35  ;;  %v579_v8 = vpop.permute.xlu1 %578  ;;  %v576_v14 = vunpack.i.h.bf16 %v574_v9  ;;  %v575_v15 = vunpack.i.l.bf16 %v574_v9 }
  0xa6   :  { %v581_v12 = vunpack.i.h.bf16 %v579_v8  ;;  %v580_v13 = vunpack.i.l.bf16 %v579_v8 }
  0xa7   :  { %435 = vmatpush1.bf16.msk.msra.mxu0 %vm433_vm1, %v434_v5  ;;  %461 = vmatpush1.bf16.msk.msra.mxu1 %vm433_vm1, %v460_v4  ;;  %v104_v22 = vsel %vm101_vm3, %v575_v15, %v576_v14 }
  0xa8   :  { %v584_v17 = vpop.permute.xlu0 %583  ;;  %v102_v21 = vsel %vm101_vm3, %v580_v13, %v581_v12 }
  0xa9   :  { %v589_v16 = vpop.permute.xlu1 %588  ;;  %v586_v46 = vunpack.i.h.bf16 %v584_v17  ;;  %v585_v20 = vunpack.i.l.bf16 %v584_v17 }
  0xaa   :  { %v591_v26 = vunpack.i.h.bf16 %v589_v16  ;;  %v590_v18 = vunpack.i.l.bf16 %v589_v16 }
  0xab   :  { %v129_v27 = vsel %vm126_vm4, %v585_v20, %v586_v46 }
  0xac   :  { %v127_v23 = vsel %vm126_vm4, %v590_v18, %v591_v26  ;;  %v437_v29 = vpack.c.bf16 %v129_v27, %v104_v22  ;;  %v594_v31 = vpop.permute.xlu0 %593 }
  0xad   :  { %v463_v28 = vpack.c.bf16 %v127_v23, %v102_v21  ;;  %v599_v30 = vpop.permute.xlu1 %598  ;;  %v596_v34 = vunpack.i.h.bf16 %v594_v31  ;;  %v595_v36 = vunpack.i.l.bf16 %v594_v31 }
  0xae   :  { %v601_v32 = vunpack.i.h.bf16 %v599_v30  ;;  %v600_v33 = vunpack.i.l.bf16 %v599_v30  ;;  %438 = vmatprep.subr.msk.bf16.mxu0 %vm718_vm10, %v437_v29 }
  0xaf   :  { %464 = vmatprep.subr.msk.bf16.mxu1 %vm718_vm10, %v463_v28  ;;  %v103_v38 = vsel %vm101_vm3, %v596_v34, %v580_v13  ;;  %v105_v39 = vsel %vm101_vm3, %v595_v36, %v575_v15 }
  0xb0   :  { %v128_v37 = vsel %vm126_vm4, %v601_v32, %v590_v18  ;;  %v130_v11 = vsel %vm126_vm4, %v600_v33, %v585_v20 }
  0xb1   :  { %v466_v40 = vpack.c.bf16 %v128_v37, %v103_v38  ;;  %v440_v41 = vpack.c.bf16 %v130_v11, %v105_v39 }
  0xb3   :  { %441 = vmatpush1.bf16.msk.msra.mxu0 %vm741_vm11, %v440_v41  ;;  %467 = vmatpush1.bf16.msk.msra.mxu1 %vm741_vm11, %v466_v40 }
  0xb6   :  { %442 = vmatmul.mubr.msk.bf16.vlgmr.msra.gmra.mxu0 %vm284_vm2, %v277_v3  ;;  %468 = vmatmul.mubr.msk.bf16.vlgmr.msra.gmra.mxu1 %vm284_vm2, %v277_v3 }
  0xb9   :  { %v282_v42 = vpop.permute.xlu0 %281 }
 0x176   :  { %v335_v43 = vpop.f32.mrf.mxu0  ;;  %v376_v44 = vpop.f32.mrf.mxu1 }
 0x177   :  { %v336_v19 = vadd.f32 %v335_v43, %v282_v42  ;;  %v377_v45 = vadd.f32 %v376_v44, %v282_v42 }
 0x178   :  { %v337_v47 = vpop.f32.mrf.mxu0  ;;  %v378_v48 = vpop.f32.mrf.mxu1 }
 0x179   :  { %v383_v49 = vsub.f32 0.0, %v336_v19  ;;  %v385_v7 = vsub.f32 0.0, %v377_v45  ;;  %v338_v50 = vadd.f32 %v337_v47, %v282_v42  ;;  %v379_v10 = vadd.f32 %v378_v48, %v282_v42 }
 0x17a   :  { %v339_v24 = vpop.f32.mrf.mxu0  ;;  %v380_v51 = vpop.f32.mrf.mxu1 }
 0x17b   :  { %v387_v6 = vmul.f32 1.442695, %v383_v49  ;;  %v391_v52 = vmul.f32 1.442695, %v385_v7  ;;  %v384_v53 = vsub.f32 0.0, %v338_v50  ;;  %v386_v54 = vsub.f32 0.0, %v379_v10 }
 0x17c   :  { %v340_v55 = vpop.f32.mrf.mxu0  ;;  %v381_v56 = vpop.f32.mrf.mxu1 }
 0x17d   :  { %603 = vpow2.f32 %v387_v6  ;;  %v389_v57 = vmul.f32 1.442695, %v384_v53  ;;  %v393_v58 = vmul.f32 1.442695, %v386_v54 }
 0x17e   :  { %605 = vpow2.f32 %v391_v52 }
 0x17f   :  { %607 = vpow2.f32 %v389_v57 }
 0x180   :  { %609 = vpow2.f32 %v393_v58 }
 0x18a   :  { %v604_v59 = vpop.eup %603 }
 0x18b   :  { %v606_v60 = vpop.eup %605  ;;  %v395_v61 = vadd.f32 1.0, %v604_v59 }
 0x18c   :  { %v608_v62 = vpop.eup %607  ;;  %v397_v63 = vadd.f32 1.0, %v606_v60 }
 0x18d   :  { %v610_v0 = vpop.eup %609  ;;  %611 = vrcp.f32 %v395_v61  ;;  %v396_v1 = vadd.f32 1.0, %v608_v62 }
 0x18e   :  { %613 = vrcp.f32 %v397_v63  ;;  %v398_v2 = vadd.f32 1.0, %v610_v0 }
 0x18f   :  { %615 = vrcp.f32 %v396_v1 }
 0x190   :  { %617 = vrcp.f32 %v398_v2 }
 0x19a   :  { %v612_v25 = vpop.eup %611 }
 0x19b   :  { %v614_v35 = vpop.eup %613  ;;  %v403_v4 = vmul.f32 %v612_v25, %v336_v19 }
 0x19c   :  { %v616_v5 = vpop.eup %615  ;;  %v405_v8 = vmul.f32 %v614_v35, %v377_v45 }
 0x19d   :  { %v618_v9 = vpop.eup %617  ;;  %407 = vst [vmem:[%s843_s3] sm:$0xff] %v403_v4  ;;  %v404_v12 = vmul.f32 %v616_v5, %v338_v50 }
 0x19e   :  { %469 = vst [vmem:[%s843_s3 + $0x10] sm:$0xff] %v405_v8  ;;  %v406_v13 = vmul.f32 %v618_v9, %v379_v10 }
 0x19f   :  { %408 = vst [vmem:[%s843_s3 + $0x8] sm:$0xff] %v404_v12 }
 0x1a0   :  { %470 = vst [vmem:[%s843_s3 + $0x18] sm:$0xff] %v406_v13 }

</bundles_post_ra>
